<compile_context>
chip_gen: v5e
topology: v5e:2x2
jax: 0.10.0
libtpu: 0.0.40
codegen_flags: <defaults>
</compile_context>

<pallas_src>
import functools

import jax
import jax.numpy as jnp
import numpy as np
from jax.experimental import pallas as pl
from jax.experimental.pallas import tpu as pltpu


def _round_up(x, m):
    return ((x + m - 1) // m) * m


def _mutual_attention_kernel(b_ref, h1_ref, h2w_ref, add1_ref, add2_ref, o_ref, *,
                             k_actual, k_cand, nbits, unroll1, unroll2):
    """One batch tile per grid step.

    b_ref    : (1, 1)            f32  bias (SMEM)
    h1_ref   : (B, seq1, hdim)   bf16 H1 (zero padded)
    h2w_ref  : (B, hdim, seq2)   bf16 W @ H2^T (precomputed, zero padded)
    add1_ref : (B, seq1, 1)      f32  0 where mask1==0 else -inf
    add2_ref : (B, 1, seq2)      f32  0 where mask2==0 else -inf
    o_ref    : (1, B, k_pad)     f32  top-k values (lane-dense padded width)
    """
    neg_inf = jnp.float32(-jnp.inf)
    f32_big = jnp.float32(3.0e38)  # finite clamp keeps the packed key a normal f32

    # --- scores: S' = relu(H1 @ H2W + b) + 1  == clamp(x + (b+1), 1, BIG) -------
    # The +1 shift makes every kept score a normal f32 >= 1.0 so packing a column
    # id into the low mantissa bits can never create denormals or NaNs.
    x = jnp.einsum('bih,bhj->bij', h1_ref[...], h2w_ref[...],
                   preferred_element_type=jnp.float32)
    s = jnp.minimum(jnp.maximum(x + (b_ref[0, 0] + 1.0), 1.0), f32_big)

    B, seq1, seq2 = s.shape
    k_pad = o_ref.shape[-1]

    # --- pack a reversed column id into the low `nbits` mantissa bits -----------
    # Every element of a row gets a unique, order-preserving f32 key: each top-k
    # iteration is then a single cross-lane max and removes exactly one element.
    low_mask = (1 << nbits) - 1
    col_rev = (seq2 - 1) - jax.lax.broadcasted_iota(jnp.int32, (1, 1, seq2), 2)
    s_key = pltpu.bitcast(
        (pltpu.bitcast(s, jnp.int32) & jnp.int32(~low_mask)) | col_rev,
        jnp.float32)

    # additive masks: +0 where kept, -inf where masked / padded
    s_key = s_key + add1_ref[...] + add2_ref[...]

    # --- Stage 1: per-row top-k_cand along the lane axis ------------------------
    if k_cand < seq2:
        cand_cols = jax.lax.broadcasted_iota(jnp.int32, (1, 1, k_cand), 2)
        cand0 = jnp.full((B, seq1, k_cand), neg_inf, dtype=jnp.float32)

        def row_body(step, carry):
            s_cur, cand = carry
            m_row = jnp.max(s_cur, axis=-1, keepdims=True)        # single XLU reduce
            s_next = jnp.where(s_cur == m_row, neg_inf, s_cur)    # unique key -> one removal
            cand_next = jnp.where(cand_cols == step, m_row, cand)
            return s_next, cand_next

        _, cand = jax.lax.fori_loop(0, k_cand, row_body, (s_key, cand0),
                                    unroll=unroll1)
    else:
        cand = s_key

    # --- Stage 2: global top-k_actual over the (B, seq1, nc) candidate set ------
    nc = cand.shape[-1]
    flat_ids = (jax.lax.broadcasted_iota(jnp.int32, (1, seq1, nc), 1) * nc
                + jax.lax.broadcasted_iota(jnp.int32, (1, seq1, nc), 2))
    big = jnp.int32(seq1 * nc)
    q_cols = jax.lax.broadcasted_iota(jnp.int32, (1, k_pad), 1)
    q0 = jnp.full((B, k_pad), neg_inf, dtype=jnp.float32)

    def top_body(step, carry):
        c_cur, q = carry
        # sublane-first, then lane reduction: intermediates stay lane-dense
        # (no (B,seq1,1)-shaped vregs that use 1 of 128 lanes).
        m = jnp.max(jnp.max(c_cur, axis=1, keepdims=True), axis=2, keepdims=True)
        idx = jnp.min(jnp.min(jnp.where(c_cur == m, flat_ids, big),
                              axis=1, keepdims=True),
                      axis=2, keepdims=True)
        c_next = jnp.where(flat_ids == idx, neg_inf, c_cur)       # remove exactly one
        q_next = jnp.where(q_cols == step, m[:, 0, :], q)
        return c_next, q_next

    _, q = jax.lax.fori_loop(0, k_actual, top_body, (cand, q0), unroll=unroll2)

    # --- back-fill -inf / missing slots with the last finite top-k value --------
    finite = q != neg_inf
    any_finite = jnp.any(finite, axis=-1, keepdims=True)
    fin_min = jnp.min(jnp.where(finite, q, jnp.inf), axis=-1, keepdims=True)
    q = jnp.where(finite, q, jnp.where(any_finite, fin_min, neg_inf))

    # strip the embedded column-id bits and undo the +1 shift (-inf stays -inf)
    q = pltpu.bitcast(pltpu.bitcast(q, jnp.int32) & jnp.int32(~low_mask),
                      jnp.float32) - 1.0
    o_ref[0] = q


def mutual_attention(inputs1, inputs2, mask1, mask2, W, b, k, *, b_tile=8,
                     vmem_budget_bytes=48 << 20):
    # NOTE: on v6e/v5e (128 MiB VMEM) b_tile can be raised to 16 and the budget
    # toward ~96 MiB; 48 MiB keeps headroom inside v7x's 64 MiB.
    seq1, bsz, hdim = inputs1.shape
    seq2 = inputs2.shape[0]

    num_elems = seq1 * seq2
    k_actual = min(k, num_elems)
    if k_actual <= 0:
        return jnp.full((bsz, max(k, 0)), -jnp.inf, jnp.float32)
    k_cand = min(k_actual, seq2)
    k_pad = _round_up(max(k, 1), 128)

    # --- batch-first layouts; hoisted W projection (one fused XLA GEMM) ---------
    H1 = jnp.transpose(inputs1, (1, 0, 2)).astype(jnp.float32)   # (bsz, seq1, hdim)
    H2 = jnp.transpose(inputs2, (1, 0, 2)).astype(jnp.float32)   # (bsz, seq2, hdim)
    H2W = jnp.einsum('hg,bjg->bhj', W.astype(jnp.float32), H2)   # (bsz, hdim, seq2)

    # --- TPU-friendly padding ----------------------------------------------------
    seq1_p = _round_up(seq1, 16)    # bf16 sublane tile for H1 / f32 sublane for S
    seq2_p = _round_up(seq2, 128)   # lane axis of S and H2W
    hdim_p = _round_up(hdim, 16)    # sublane axis of H2W (bf16); zero-pad is exact
    nbits = max(1, (seq2_p - 1).bit_length())

    neg_inf = float('-inf')
    add1 = jnp.where(jnp.transpose(mask1) == 0, 0.0, neg_inf).astype(jnp.float32)
    add2 = jnp.where(jnp.transpose(mask2) == 0, 0.0, neg_inf).astype(jnp.float32)

    # --- batch tile: >= 2 grid steps (v7x 2-TC sharding) and VMEM budget ---------
    bt = max(1, min(b_tile, (bsz + 1) // 2))

    def vmem_need(t):
        ins = t * (seq1_p * hdim_p + hdim_p * seq2_p) * 2 + t * (seq1_p + seq2_p) * 4
        outs = t * k_pad * 4
        work = 3 * t * seq1_p * seq2_p * 4 + 2 * t * seq1_p * max(k_cand, 1) * 4
        return 2 * (ins + outs) + work   # double-buffered I/O + live intermediates

    while bt > 1 and vmem_need(bt) > vmem_budget_bytes:
        bt //= 2
    bsz_pad = _round_up(bsz, bt)
    n_steps = bsz_pad // bt
    vmem_limit = int(min(max(vmem_need(bt) + (4 << 20), 32 << 20), 64 << 20))
    # For very large seq/hdim (need > budget even at bt=1) an extra 'arbitrary'
    # hdim grid axis with a VMEM accumulator would be required.

    # --- pad arrays (padding rows/cols masked to -inf; hdim padded with zeros) ---
    H1p = jnp.pad(H1, ((0, bsz_pad - bsz), (0, seq1_p - seq1),
                       (0, hdim_p - hdim))).astype(jnp.bfloat16)
    H2Wp = jnp.pad(H2W, ((0, bsz_pad - bsz), (0, hdim_p - hdim),
                         (0, seq2_p - seq2))).astype(jnp.bfloat16)
    add1p = jnp.pad(add1, ((0, bsz_pad - bsz), (0, seq1_p - seq1)),
                    constant_values=neg_inf)[:, :, None]          # (bsz_pad, seq1_p, 1)
    add2p = jnp.pad(add2, ((0, bsz_pad - bsz), (0, seq2_p - seq2)),
                    constant_values=neg_inf)[:, None, :]          # (bsz_pad, 1, seq2_p)
    b_arr = jnp.asarray(b, jnp.float32).reshape(1, 1)

    kernel = functools.partial(
        _mutual_attention_kernel,
        k_actual=k_actual, k_cand=k_cand, nbits=nbits,
        unroll1=max(1, min(k_cand, 8)),     # bounded unroll (was full unroll)
        unroll2=max(1, min(k_actual, 8)))

    out = pl.pallas_call(
        kernel,
        out_shape=jax.ShapeDtypeStruct((n_steps, bt, k_pad), jnp.float32),
        grid_spec=pltpu.PrefetchScalarGridSpec(
            num_scalar_prefetch=0,
            grid=(n_steps,),
            in_specs=[
                pl.BlockSpec(memory_space=pltpu.MemorySpace.SMEM),          # bias
                pl.BlockSpec((bt, seq1_p, hdim_p), lambda i: (i, 0, 0)),    # H1
                pl.BlockSpec((bt, hdim_p, seq2_p), lambda i: (i, 0, 0)),    # W @ H2^T
                pl.BlockSpec((bt, seq1_p, 1), lambda i: (i, 0, 0)),         # add-mask 1
                pl.BlockSpec((bt, 1, seq2_p), lambda i: (i, 0, 0)),         # add-mask 2
            ],
            out_specs=pl.BlockSpec((1, bt, k_pad), lambda i: (i, 0, 0)),
        ),
        compiler_params=pltpu.CompilerParams(
            dimension_semantics=("parallel",),
            vmem_limit_bytes=vmem_limit),
    )(b_arr, H1p, H2Wp, add1p, add2p)

    return out.reshape(bsz_pad, k_pad)[:bsz, :k]


def reference(inputs1, inputs2, mask1, mask2, W, b, k):
    """Pure-JAX reference mirroring the PyTorch forward (same bf16-operand /
    f32-accumulation matmul precision as the kernel)."""
    seq1, bsz, hdim = inputs1.shape
    seq2 = inputs2.shape[0]
    H1 = jnp.transpose(inputs1, (1, 0, 2)).astype(jnp.float32)
    H2 = jnp.transpose(inputs2, (1, 0, 2)).astype(jnp.float32)
    H2W = jnp.einsum('hg,bjg->bhj', W.astype(jnp.float32), H2)
    S = jnp.einsum('bih,bhj->bij',
                   H1.astype(jnp.bfloat16), H2W.astype(jnp.bfloat16),
                   preferred_element_type=jnp.float32) + jnp.float32(b)
    S = jnp.maximum(S, 0.0)
    m1 = (mask1 == 0).astype(jnp.float32).T
    m2 = (mask2 == 0).astype(jnp.float32).T
    keep = m1[:, :, None] * m2[:, None, :]
    S = jnp.where(keep > 0, S, -jnp.inf)
    Sf = S.reshape(bsz, -1)
    k_actual = min(k, Sf.shape[1])
    q, _ = jax.lax.top_k(Sf, k_actual)
    finite = q != -jnp.inf
    fill = jnp.where(jnp.any(finite, axis=-1),
                     jnp.min(jnp.where(finite, q, jnp.inf), axis=-1),
                     -jnp.inf)
    q = jnp.where(finite, q, fill[:, None])
    if k_actual < k:
        q = jnp.concatenate(
            [q, jnp.broadcast_to(q[:, -1:], (bsz, k - k_actual))], axis=-1)
    return q


if __name__ == "__main__":
    key = jax.random.PRNGKey(0)
    bsz, seq1, seq2, hdim, k = 2, 8, 6, 32, 5
    k1, k2, k3, k4, k5 = jax.random.split(key, 5)

    inputs1 = jax.random.normal(k1, (seq1, bsz, hdim), jnp.float32)
    inputs2 = jax.random.normal(k2, (seq2, bsz, hdim), jnp.float32)
    # mask value 0 -> position participates (per the module's .eq(0) logic)
    mask1 = (jax.random.uniform(k3, (seq1, bsz)) < 0.25).astype(jnp.int32)
    mask2 = (jax.random.uniform(k4, (seq2, bsz)) < 0.25).astype(jnp.int32)

    # Deterministic parameter init (xavier-uniform-like for W, small constant b)
    limit = float(np.sqrt(6.0 / (hdim + hdim)))
    W = jax.random.uniform(k5, (hdim, hdim), jnp.float32, -limit, limit)
    b = jnp.float32(0.1)

    out = mutual_attention(inputs1, inputs2, mask1, mask2, W, b, k)
    out = jax.block_until_ready(out)

    ref = reference(inputs1, inputs2, mask1, mask2, W, b, k)
    np.testing.assert_allclose(np.asarray(out), np.asarray(ref),
                               rtol=1e-3, atol=1e-3)
    print("KERNEL_OK")
</pallas_src>

<mosaic_0001>
module attributes {stable_mosaic.version = 11 : i64} {
  func.func @_mutual_attention_kernel(%arg0: i32, %arg1: memref<1x1xf32, #tpu.memory_space<smem>>, %arg2: memref<1x16x32xbf16, #tpu.memory_space<vmem>>, %arg3: memref<1x32x128xbf16, #tpu.memory_space<vmem>>, %arg4: memref<1x16x1xf32, #tpu.memory_space<vmem>>, %arg5: memref<1x1x128xf32, #tpu.memory_space<vmem>>, %arg6: memref<1x1x128xf32, #tpu.memory_space<vmem>>) attributes {dimension_semantics = [#tpu.dimension_semantics<parallel>], iteration_bounds = array<i64: 2>, scalar_prefetch = 0 : i64, scratch_operands = 0 : i64, tpu.core_type = #tpu.core_type<tc>, window_params = [{transform_indices = @transform_0, window_bounds = array<i64: 1, 1>}, {transform_indices = @transform_1, window_bounds = array<i64: 1, 16, 32>}, {transform_indices = @transform_2, window_bounds = array<i64: 1, 32, 128>}, {transform_indices = @transform_3, window_bounds = array<i64: 1, 16, 1>}, {transform_indices = @transform_4, window_bounds = array<i64: 1, 1, 128>}, {transform_indices = @transform_5, window_bounds = array<i64: 1, 1, 128>}]} {
    %c0 = arith.constant 0 : index
    %c0_0 = arith.constant 0 : index
    %c0_1 = arith.constant 0 : index
    %0 = vector.load %arg2[%c0, %c0_0, %c0_1] : memref<1x16x32xbf16, #tpu.memory_space<vmem>>, vector<1x16x32xbf16>
    %c0_2 = arith.constant 0 : index
    %c0_3 = arith.constant 0 : index
    %c0_4 = arith.constant 0 : index
    %1 = vector.load %arg3[%c0_2, %c0_3, %c0_4] : memref<1x32x128xbf16, #tpu.memory_space<vmem>>, vector<1x32x128xbf16>
    "tpu.trace_start"() <{level = 10 : i32, message = "bih,bhj->bij"}> : () -> ()
    %cst = arith.constant dense<0.000000e+00> : vector<1x16x128xf32>
    %2 = tpu.matmul %0, %1, %cst {dimension_numbers = #tpu.dot_dimension_numbers<[2], [1], [1], [2], [0, 0, 0, 1, 1, 2], [0], [0]>} : vector<1x16x32xbf16>, vector<1x32x128xbf16>, vector<1x16x128xf32> -> vector<1x16x128xf32>
    "tpu.trace_stop"() : () -> ()
    %c0_5 = arith.constant 0 : index
    %c0_6 = arith.constant 0 : index
    %3 = memref.load %arg1[%c0_5, %c0_6] : memref<1x1xf32, #tpu.memory_space<smem>>
    %cst_7 = arith.constant 1.000000e+00 : f32
    %4 = arith.addf %3, %cst_7 : f32
    %5 = vector.broadcast %4 : f32 to vector<1x16x128xf32>
    %6 = arith.addf %2, %5 : vector<1x16x128xf32>
    %cst_8 = arith.constant 1.000000e+00 : f32
    %7 = vector.broadcast %cst_8 : f32 to vector<1x16x128xf32>
    %8 = arith.maximumf %6, %7 : vector<1x16x128xf32>
    %cst_9 = arith.constant 3.000000e+38 : f32
    %9 = vector.broadcast %cst_9 : f32 to vector<1x16x128xf32>
    %10 = arith.minimumf %8, %9 : vector<1x16x128xf32>
    %11 = tpu.iota {dimensions = array<i32: 2>} : vector<1x1x128xi32>
    %c127_i32 = arith.constant 127 : i32
    %12 = vector.broadcast %c127_i32 : i32 to vector<1x1x128xi32>
    %13 = arith.subi %12, %11 : vector<1x1x128xi32>
    %14 = tpu.bitcast %10 : vector<1x16x128xf32> -> vector<1x16x128xi32>
    %c-128_i32 = arith.constant -128 : i32
    %15 = vector.broadcast %c-128_i32 : i32 to vector<1x16x128xi32>
    %16 = arith.andi %14, %15 : vector<1x16x128xi32>
    %17 = vector.broadcast %13 : vector<1x1x128xi32> to vector<1x16x128xi32>
    %18 = arith.ori %16, %17 : vector<1x16x128xi32>
    %19 = tpu.bitcast %18 : vector<1x16x128xi32> -> vector<1x16x128xf32>
    %c0_10 = arith.constant 0 : index
    %c0_11 = arith.constant 0 : index
    %c0_12 = arith.constant 0 : index
    %20 = vector.load %arg4[%c0_10, %c0_11, %c0_12] : memref<1x16x1xf32, #tpu.memory_space<vmem>>, vector<1x16x1xf32>
    %21 = vector.broadcast %20 : vector<1x16x1xf32> to vector<1x16x128xf32>
    %22 = arith.addf %19, %21 : vector<1x16x128xf32>
    %c0_13 = arith.constant 0 : index
    %c0_14 = arith.constant 0 : index
    %c0_15 = arith.constant 0 : index
    %23 = vector.load %arg5[%c0_13, %c0_14, %c0_15] : memref<1x1x128xf32, #tpu.memory_space<vmem>>, vector<1x1x128xf32>
    %24 = vector.broadcast %23 : vector<1x1x128xf32> to vector<1x16x128xf32>
    %25 = arith.addf %22, %24 : vector<1x16x128xf32>
    %26 = tpu.iota {dimensions = array<i32: 2>} : vector<1x1x5xi32>
    %cst_16 = arith.constant 0xFF800000 : f32
    %27 = vector.broadcast %cst_16 : f32 to vector<1x16x5xf32>
    %cst_17 = arith.constant 0xFF800000 : f32
    %c0_i32 = arith.constant 0 : i32
    %cst_18 = arith.constant dense<0xFF800000> : vector<1x16xf32>
    %28 = vector.multi_reduction <maximumf>, %25, %cst_18 [2] : vector<1x16x128xf32> to vector<1x16xf32>
    %29 = vector.shape_cast %28 : vector<1x16xf32> to vector<1x16x1xf32>
    %30 = vector.broadcast %29 : vector<1x16x1xf32> to vector<1x16x128xf32>
    %31 = arith.cmpf oeq, %25, %30 : vector<1x16x128xf32>
    %32 = vector.broadcast %cst_17 : f32 to vector<1x16x128xf32>
    %33 = arith.select %31, %32, %25 : vector<1x16x128xi1>, vector<1x16x128xf32>
    %34 = vector.broadcast %c0_i32 : i32 to vector<1x1x5xi32>
    %35 = arith.cmpi eq, %26, %34 : vector<1x1x5xi32>
    %36 = vector.shape_cast %35 : vector<1x1x5xi1> to vector<1x1x5xi1>
    %37 = vector.broadcast %36 : vector<1x1x5xi1> to vector<1x16x5xi1>
    %38 = vector.shape_cast %29 : vector<1x16x1xf32> to vector<1x16x1xf32>
    %39 = vector.broadcast %38 : vector<1x16x1xf32> to vector<1x16x5xf32>
    %40 = arith.select %37, %39, %27 : vector<1x16x5xi1>, vector<1x16x5xf32>
    %c1_i32 = arith.constant 1 : i32
    %cst_19 = arith.constant dense<0xFF800000> : vector<1x16xf32>
    %41 = vector.multi_reduction <maximumf>, %33, %cst_19 [2] : vector<1x16x128xf32> to vector<1x16xf32>
    %42 = vector.shape_cast %41 : vector<1x16xf32> to vector<1x16x1xf32>
    %43 = vector.broadcast %42 : vector<1x16x1xf32> to vector<1x16x128xf32>
    %44 = arith.cmpf oeq, %33, %43 : vector<1x16x128xf32>
    %45 = vector.broadcast %cst_17 : f32 to vector<1x16x128xf32>
    %46 = arith.select %44, %45, %33 : vector<1x16x128xi1>, vector<1x16x128xf32>
    %47 = vector.broadcast %c1_i32 : i32 to vector<1x1x5xi32>
    %48 = arith.cmpi eq, %26, %47 : vector<1x1x5xi32>
    %49 = vector.shape_cast %48 : vector<1x1x5xi1> to vector<1x1x5xi1>
    %50 = vector.broadcast %49 : vector<1x1x5xi1> to vector<1x16x5xi1>
    %51 = vector.shape_cast %42 : vector<1x16x1xf32> to vector<1x16x1xf32>
    %52 = vector.broadcast %51 : vector<1x16x1xf32> to vector<1x16x5xf32>
    %53 = arith.select %50, %52, %40 : vector<1x16x5xi1>, vector<1x16x5xf32>
    %c2_i32 = arith.constant 2 : i32
    %cst_20 = arith.constant dense<0xFF800000> : vector<1x16xf32>
    %54 = vector.multi_reduction <maximumf>, %46, %cst_20 [2] : vector<1x16x128xf32> to vector<1x16xf32>
    %55 = vector.shape_cast %54 : vector<1x16xf32> to vector<1x16x1xf32>
    %56 = vector.broadcast %55 : vector<1x16x1xf32> to vector<1x16x128xf32>
    %57 = arith.cmpf oeq, %46, %56 : vector<1x16x128xf32>
    %58 = vector.broadcast %cst_17 : f32 to vector<1x16x128xf32>
    %59 = arith.select %57, %58, %46 : vector<1x16x128xi1>, vector<1x16x128xf32>
    %60 = vector.broadcast %c2_i32 : i32 to vector<1x1x5xi32>
    %61 = arith.cmpi eq, %26, %60 : vector<1x1x5xi32>
    %62 = vector.shape_cast %61 : vector<1x1x5xi1> to vector<1x1x5xi1>
    %63 = vector.broadcast %62 : vector<1x1x5xi1> to vector<1x16x5xi1>
    %64 = vector.shape_cast %55 : vector<1x16x1xf32> to vector<1x16x1xf32>
    %65 = vector.broadcast %64 : vector<1x16x1xf32> to vector<1x16x5xf32>
    %66 = arith.select %63, %65, %53 : vector<1x16x5xi1>, vector<1x16x5xf32>
    %c3_i32 = arith.constant 3 : i32
    %cst_21 = arith.constant dense<0xFF800000> : vector<1x16xf32>
    %67 = vector.multi_reduction <maximumf>, %59, %cst_21 [2] : vector<1x16x128xf32> to vector<1x16xf32>
    %68 = vector.shape_cast %67 : vector<1x16xf32> to vector<1x16x1xf32>
    %69 = vector.broadcast %68 : vector<1x16x1xf32> to vector<1x16x128xf32>
    %70 = arith.cmpf oeq, %59, %69 : vector<1x16x128xf32>
    %71 = vector.broadcast %cst_17 : f32 to vector<1x16x128xf32>
    %72 = arith.select %70, %71, %59 : vector<1x16x128xi1>, vector<1x16x128xf32>
    %73 = vector.broadcast %c3_i32 : i32 to vector<1x1x5xi32>
    %74 = arith.cmpi eq, %26, %73 : vector<1x1x5xi32>
    %75 = vector.shape_cast %74 : vector<1x1x5xi1> to vector<1x1x5xi1>
    %76 = vector.broadcast %75 : vector<1x1x5xi1> to vector<1x16x5xi1>
    %77 = vector.shape_cast %68 : vector<1x16x1xf32> to vector<1x16x1xf32>
    %78 = vector.broadcast %77 : vector<1x16x1xf32> to vector<1x16x5xf32>
    %79 = arith.select %76, %78, %66 : vector<1x16x5xi1>, vector<1x16x5xf32>
    %c4_i32 = arith.constant 4 : i32
    %cst_22 = arith.constant dense<0xFF800000> : vector<1x16xf32>
    %80 = vector.multi_reduction <maximumf>, %72, %cst_22 [2] : vector<1x16x128xf32> to vector<1x16xf32>
    %81 = vector.shape_cast %80 : vector<1x16xf32> to vector<1x16x1xf32>
    %82 = vector.broadcast %81 : vector<1x16x1xf32> to vector<1x16x128xf32>
    %83 = arith.cmpf oeq, %72, %82 : vector<1x16x128xf32>
    %84 = vector.broadcast %cst_17 : f32 to vector<1x16x128xf32>
    %85 = arith.select %83, %84, %72 : vector<1x16x128xi1>, vector<1x16x128xf32>
    %86 = vector.broadcast %c4_i32 : i32 to vector<1x1x5xi32>
    %87 = arith.cmpi eq, %26, %86 : vector<1x1x5xi32>
    %88 = vector.shape_cast %87 : vector<1x1x5xi1> to vector<1x1x5xi1>
    %89 = vector.broadcast %88 : vector<1x1x5xi1> to vector<1x16x5xi1>
    %90 = vector.shape_cast %81 : vector<1x16x1xf32> to vector<1x16x1xf32>
    %91 = vector.broadcast %90 : vector<1x16x1xf32> to vector<1x16x5xf32>
    %92 = arith.select %89, %91, %79 : vector<1x16x5xi1>, vector<1x16x5xf32>
    %c5_i32 = arith.constant 5 : i32
    %93 = tpu.iota {dimensions = array<i32: 1>} : vector<1x16x5xi32>
    %c5_i32_23 = arith.constant 5 : i32
    %94 = vector.broadcast %c5_i32_23 : i32 to vector<1x16x5xi32>
    %95 = arith.muli %93, %94 : vector<1x16x5xi32>
    %96 = tpu.iota {dimensions = array<i32: 2>} : vector<1x16x5xi32>
    %97 = arith.addi %95, %96 : vector<1x16x5xi32>
    %98 = tpu.iota {dimensions = array<i32: 1>} : vector<1x128xi32>
    %cst_24 = arith.constant 0xFF800000 : f32
    %99 = vector.broadcast %cst_24 : f32 to vector<1x128xf32>
    %c80_i32 = arith.constant 80 : i32
    %cst_25 = arith.constant 0xFF800000 : f32
    %c0_i32_26 = arith.constant 0 : i32
    %cst_27 = arith.constant dense<0xFF800000> : vector<1x5xf32>
    %100 = vector.multi_reduction <maximumf>, %92, %cst_27 [1] : vector<1x16x5xf32> to vector<1x5xf32>
    %101 = vector.shape_cast %100 : vector<1x5xf32> to vector<1x1x5xf32>
    %cst_28 = arith.constant dense<0xFF800000> : vector<1x1xf32>
    %102 = vector.multi_reduction <maximumf>, %101, %cst_28 [2] : vector<1x1x5xf32> to vector<1x1xf32>
    %103 = vector.shape_cast %102 : vector<1x1xf32> to vector<1x1x1xf32>
    %104 = vector.broadcast %103 : vector<1x1x1xf32> to vector<1x16x5xf32>
    %105 = arith.cmpf oeq, %92, %104 : vector<1x16x5xf32>
    %106 = vector.broadcast %c80_i32 : i32 to vector<1x16x5xi32>
    %107 = arith.select %105, %97, %106 : vector<1x16x5xi1>, vector<1x16x5xi32>
    %cst_29 = arith.constant dense<2147483647> : vector<1x5xi32>
    %108 = vector.multi_reduction <minsi>, %107, %cst_29 [1] : vector<1x16x5xi32> to vector<1x5xi32>
    %109 = vector.shape_cast %108 : vector<1x5xi32> to vector<1x1x5xi32>
    %cst_30 = arith.constant dense<2147483647> : vector<1x1xi32>
    %110 = vector.multi_reduction <minsi>, %109, %cst_30 [2] : vector<1x1x5xi32> to vector<1x1xi32>
    %111 = vector.shape_cast %110 : vector<1x1xi32> to vector<1x1x1xi32>
    %112 = vector.broadcast %111 : vector<1x1x1xi32> to vector<1x16x5xi32>
    %113 = arith.cmpi eq, %97, %112 : vector<1x16x5xi32>
    %114 = vector.broadcast %cst_25 : f32 to vector<1x16x5xf32>
    %115 = arith.select %113, %114, %92 : vector<1x16x5xi1>, vector<1x16x5xf32>
    %116 = vector.broadcast %c0_i32_26 : i32 to vector<1x128xi32>
    %117 = arith.cmpi eq, %98, %116 : vector<1x128xi32>
    %118 = vector.shape_cast %103 : vector<1x1x1xf32> to vector<1x1xf32>
    %119 = vector.shape_cast %118 : vector<1x1xf32> to vector<1x1xf32>
    %120 = vector.broadcast %119 : vector<1x1xf32> to vector<1x128xf32>
    %121 = arith.select %117, %120, %99 : vector<1x128xi1>, vector<1x128xf32>
    %c1_i32_31 = arith.constant 1 : i32
    %cst_32 = arith.constant dense<0xFF800000> : vector<1x5xf32>
    %122 = vector.multi_reduction <maximumf>, %115, %cst_32 [1] : vector<1x16x5xf32> to vector<1x5xf32>
    %123 = vector.shape_cast %122 : vector<1x5xf32> to vector<1x1x5xf32>
    %cst_33 = arith.constant dense<0xFF800000> : vector<1x1xf32>
    %124 = vector.multi_reduction <maximumf>, %123, %cst_33 [2] : vector<1x1x5xf32> to vector<1x1xf32>
    %125 = vector.shape_cast %124 : vector<1x1xf32> to vector<1x1x1xf32>
    %126 = vector.broadcast %125 : vector<1x1x1xf32> to vector<1x16x5xf32>
    %127 = arith.cmpf oeq, %115, %126 : vector<1x16x5xf32>
    %128 = vector.broadcast %c80_i32 : i32 to vector<1x16x5xi32>
    %129 = arith.select %127, %97, %128 : vector<1x16x5xi1>, vector<1x16x5xi32>
    %cst_34 = arith.constant dense<2147483647> : vector<1x5xi32>
    %130 = vector.multi_reduction <minsi>, %129, %cst_34 [1] : vector<1x16x5xi32> to vector<1x5xi32>
    %131 = vector.shape_cast %130 : vector<1x5xi32> to vector<1x1x5xi32>
    %cst_35 = arith.constant dense<2147483647> : vector<1x1xi32>
    %132 = vector.multi_reduction <minsi>, %131, %cst_35 [2] : vector<1x1x5xi32> to vector<1x1xi32>
    %133 = vector.shape_cast %132 : vector<1x1xi32> to vector<1x1x1xi32>
    %134 = vector.broadcast %133 : vector<1x1x1xi32> to vector<1x16x5xi32>
    %135 = arith.cmpi eq, %97, %134 : vector<1x16x5xi32>
    %136 = vector.broadcast %cst_25 : f32 to vector<1x16x5xf32>
    %137 = arith.select %135, %136, %115 : vector<1x16x5xi1>, vector<1x16x5xf32>
    %138 = vector.broadcast %c1_i32_31 : i32 to vector<1x128xi32>
    %139 = arith.cmpi eq, %98, %138 : vector<1x128xi32>
    %140 = vector.shape_cast %125 : vector<1x1x1xf32> to vector<1x1xf32>
    %141 = vector.shape_cast %140 : vector<1x1xf32> to vector<1x1xf32>
    %142 = vector.broadcast %141 : vector<1x1xf32> to vector<1x128xf32>
    %143 = arith.select %139, %142, %121 : vector<1x128xi1>, vector<1x128xf32>
    %c2_i32_36 = arith.constant 2 : i32
    %cst_37 = arith.constant dense<0xFF800000> : vector<1x5xf32>
    %144 = vector.multi_reduction <maximumf>, %137, %cst_37 [1] : vector<1x16x5xf32> to vector<1x5xf32>
    %145 = vector.shape_cast %144 : vector<1x5xf32> to vector<1x1x5xf32>
    %cst_38 = arith.constant dense<0xFF800000> : vector<1x1xf32>
    %146 = vector.multi_reduction <maximumf>, %145, %cst_38 [2] : vector<1x1x5xf32> to vector<1x1xf32>
    %147 = vector.shape_cast %146 : vector<1x1xf32> to vector<1x1x1xf32>
    %148 = vector.broadcast %147 : vector<1x1x1xf32> to vector<1x16x5xf32>
    %149 = arith.cmpf oeq, %137, %148 : vector<1x16x5xf32>
    %150 = vector.broadcast %c80_i32 : i32 to vector<1x16x5xi32>
    %151 = arith.select %149, %97, %150 : vector<1x16x5xi1>, vector<1x16x5xi32>
    %cst_39 = arith.constant dense<2147483647> : vector<1x5xi32>
    %152 = vector.multi_reduction <minsi>, %151, %cst_39 [1] : vector<1x16x5xi32> to vector<1x5xi32>
    %153 = vector.shape_cast %152 : vector<1x5xi32> to vector<1x1x5xi32>
    %cst_40 = arith.constant dense<2147483647> : vector<1x1xi32>
    %154 = vector.multi_reduction <minsi>, %153, %cst_40 [2] : vector<1x1x5xi32> to vector<1x1xi32>
    %155 = vector.shape_cast %154 : vector<1x1xi32> to vector<1x1x1xi32>
    %156 = vector.broadcast %155 : vector<1x1x1xi32> to vector<1x16x5xi32>
    %157 = arith.cmpi eq, %97, %156 : vector<1x16x5xi32>
    %158 = vector.broadcast %cst_25 : f32 to vector<1x16x5xf32>
    %159 = arith.select %157, %158, %137 : vector<1x16x5xi1>, vector<1x16x5xf32>
    %160 = vector.broadcast %c2_i32_36 : i32 to vector<1x128xi32>
    %161 = arith.cmpi eq, %98, %160 : vector<1x128xi32>
    %162 = vector.shape_cast %147 : vector<1x1x1xf32> to vector<1x1xf32>
    %163 = vector.shape_cast %162 : vector<1x1xf32> to vector<1x1xf32>
    %164 = vector.broadcast %163 : vector<1x1xf32> to vector<1x128xf32>
    %165 = arith.select %161, %164, %143 : vector<1x128xi1>, vector<1x128xf32>
    %c3_i32_41 = arith.constant 3 : i32
    %cst_42 = arith.constant dense<0xFF800000> : vector<1x5xf32>
    %166 = vector.multi_reduction <maximumf>, %159, %cst_42 [1] : vector<1x16x5xf32> to vector<1x5xf32>
    %167 = vector.shape_cast %166 : vector<1x5xf32> to vector<1x1x5xf32>
    %cst_43 = arith.constant dense<0xFF800000> : vector<1x1xf32>
    %168 = vector.multi_reduction <maximumf>, %167, %cst_43 [2] : vector<1x1x5xf32> to vector<1x1xf32>
    %169 = vector.shape_cast %168 : vector<1x1xf32> to vector<1x1x1xf32>
    %170 = vector.broadcast %169 : vector<1x1x1xf32> to vector<1x16x5xf32>
    %171 = arith.cmpf oeq, %159, %170 : vector<1x16x5xf32>
    %172 = vector.broadcast %c80_i32 : i32 to vector<1x16x5xi32>
    %173 = arith.select %171, %97, %172 : vector<1x16x5xi1>, vector<1x16x5xi32>
    %cst_44 = arith.constant dense<2147483647> : vector<1x5xi32>
    %174 = vector.multi_reduction <minsi>, %173, %cst_44 [1] : vector<1x16x5xi32> to vector<1x5xi32>
    %175 = vector.shape_cast %174 : vector<1x5xi32> to vector<1x1x5xi32>
    %cst_45 = arith.constant dense<2147483647> : vector<1x1xi32>
    %176 = vector.multi_reduction <minsi>, %175, %cst_45 [2] : vector<1x1x5xi32> to vector<1x1xi32>
    %177 = vector.shape_cast %176 : vector<1x1xi32> to vector<1x1x1xi32>
    %178 = vector.broadcast %177 : vector<1x1x1xi32> to vector<1x16x5xi32>
    %179 = arith.cmpi eq, %97, %178 : vector<1x16x5xi32>
    %180 = vector.broadcast %cst_25 : f32 to vector<1x16x5xf32>
    %181 = arith.select %179, %180, %159 : vector<1x16x5xi1>, vector<1x16x5xf32>
    %182 = vector.broadcast %c3_i32_41 : i32 to vector<1x128xi32>
    %183 = arith.cmpi eq, %98, %182 : vector<1x128xi32>
    %184 = vector.shape_cast %169 : vector<1x1x1xf32> to vector<1x1xf32>
    %185 = vector.shape_cast %184 : vector<1x1xf32> to vector<1x1xf32>
    %186 = vector.broadcast %185 : vector<1x1xf32> to vector<1x128xf32>
    %187 = arith.select %183, %186, %165 : vector<1x128xi1>, vector<1x128xf32>
    %c4_i32_46 = arith.constant 4 : i32
    %cst_47 = arith.constant dense<0xFF800000> : vector<1x5xf32>
    %188 = vector.multi_reduction <maximumf>, %181, %cst_47 [1] : vector<1x16x5xf32> to vector<1x5xf32>
    %189 = vector.shape_cast %188 : vector<1x5xf32> to vector<1x1x5xf32>
    %cst_48 = arith.constant dense<0xFF800000> : vector<1x1xf32>
    %190 = vector.multi_reduction <maximumf>, %189, %cst_48 [2] : vector<1x1x5xf32> to vector<1x1xf32>
    %191 = vector.shape_cast %190 : vector<1x1xf32> to vector<1x1x1xf32>
    %192 = vector.broadcast %191 : vector<1x1x1xf32> to vector<1x16x5xf32>
    %193 = arith.cmpf oeq, %181, %192 : vector<1x16x5xf32>
    %194 = vector.broadcast %c80_i32 : i32 to vector<1x16x5xi32>
    %195 = arith.select %193, %97, %194 : vector<1x16x5xi1>, vector<1x16x5xi32>
    %cst_49 = arith.constant dense<2147483647> : vector<1x5xi32>
    %196 = vector.multi_reduction <minsi>, %195, %cst_49 [1] : vector<1x16x5xi32> to vector<1x5xi32>
    %197 = vector.shape_cast %196 : vector<1x5xi32> to vector<1x1x5xi32>
    %cst_50 = arith.constant dense<2147483647> : vector<1x1xi32>
    %198 = vector.multi_reduction <minsi>, %197, %cst_50 [2] : vector<1x1x5xi32> to vector<1x1xi32>
    %199 = vector.shape_cast %198 : vector<1x1xi32> to vector<1x1x1xi32>
    %200 = vector.broadcast %199 : vector<1x1x1xi32> to vector<1x16x5xi32>
    %201 = arith.cmpi eq, %97, %200 : vector<1x16x5xi32>
    %202 = vector.broadcast %cst_25 : f32 to vector<1x16x5xf32>
    %203 = arith.select %201, %202, %181 : vector<1x16x5xi1>, vector<1x16x5xf32>
    %204 = vector.broadcast %c4_i32_46 : i32 to vector<1x128xi32>
    %205 = arith.cmpi eq, %98, %204 : vector<1x128xi32>
    %206 = vector.shape_cast %191 : vector<1x1x1xf32> to vector<1x1xf32>
    %207 = vector.shape_cast %206 : vector<1x1xf32> to vector<1x1xf32>
    %208 = vector.broadcast %207 : vector<1x1xf32> to vector<1x128xf32>
    %209 = arith.select %205, %208, %187 : vector<1x128xi1>, vector<1x128xf32>
    %c5_i32_51 = arith.constant 5 : i32
    %cst_52 = arith.constant 0xFF800000 : f32
    %210 = vector.broadcast %cst_52 : f32 to vector<1x128xf32>
    %211 = arith.cmpf one, %209, %210 : vector<1x128xf32>
    %cst_53 = arith.constant 1.000000e+00 : f32
    %cst_54 = arith.constant 0.000000e+00 : f32
    %212 = vector.broadcast %cst_53 : f32 to vector<1x128xf32>
    %213 = vector.broadcast %cst_54 : f32 to vector<1x128xf32>
    %214 = arith.select %211, %212, %213 : vector<1x128xi1>, vector<1x128xf32>
    %cst_55 = arith.constant dense<0xFF800000> : vector<1xf32>
    %215 = vector.multi_reduction <maximumf>, %214, %cst_55 [1] : vector<1x128xf32> to vector<1xf32>
    %cst_56 = arith.constant 0.000000e+00 : f32
    %216 = vector.broadcast %cst_56 : f32 to vector<1xf32>
    %217 = arith.cmpf ogt, %215, %216 : vector<1xf32>
    %218 = vector.shape_cast %217 : vector<1xi1> to vector<1x1xi1>
    %cst_57 = arith.constant 0x7F800000 : f32
    %219 = vector.broadcast %cst_57 : f32 to vector<1x128xf32>
    %220 = arith.select %211, %209, %219 : vector<1x128xi1>, vector<1x128xf32>
    %cst_58 = arith.constant dense<0x7F800000> : vector<1xf32>
    %221 = vector.multi_reduction <minimumf>, %220, %cst_58 [1] : vector<1x128xf32> to vector<1xf32>
    %222 = vector.shape_cast %221 : vector<1xf32> to vector<1x1xf32>
    %cst_59 = arith.constant 0xFF800000 : f32
    %223 = vector.broadcast %cst_59 : f32 to vector<1x1xf32>
    %224 = arith.select %218, %222, %223 : vector<1x1xi1>, vector<1x1xf32>
    %225 = vector.shape_cast %224 : vector<1x1xf32> to vector<1x1xf32>
    %226 = vector.broadcast %225 : vector<1x1xf32> to vector<1x128xf32>
    %227 = arith.select %211, %209, %226 : vector<1x128xi1>, vector<1x128xf32>
    %228 = tpu.bitcast %227 : vector<1x128xf32> -> vector<1x128xi32>
    %c-128_i32_60 = arith.constant -128 : i32
    %229 = vector.broadcast %c-128_i32_60 : i32 to vector<1x128xi32>
    %230 = arith.andi %228, %229 : vector<1x128xi32>
    %231 = tpu.bitcast %230 : vector<1x128xi32> -> vector<1x128xf32>
    %cst_61 = arith.constant 1.000000e+00 : f32
    %232 = vector.broadcast %cst_61 : f32 to vector<1x128xf32>
    %233 = arith.subf %231, %232 : vector<1x128xf32>
    %c0_62 = arith.constant 0 : index
    %c0_63 = arith.constant 0 : index
    %c0_64 = arith.constant 0 : index
    %234 = vector.load %arg6[%c0_62, %c0_63, %c0_64] : memref<1x1x128xf32, #tpu.memory_space<vmem>>, vector<1x1x128xf32>
    %235 = vector.shape_cast %234 : vector<1x1x128xf32> to vector<1x128xf32>
    %236 = vector.shape_cast %233 : vector<1x128xf32> to vector<1x1x128xf32>
    tpu.vector_store %arg6[%c0_62, %c0_63, %c0_64], %236 {strides = array<i32>} : memref<1x1x128xf32, #tpu.memory_space<vmem>>, vector<1x1x128xf32>,
    return
  }
  func.func @transform_0(%arg0: i32) -> (i32, i32) {
    %c0_i32 = arith.constant 0 : i32
    %c0_i32_0 = arith.constant 0 : i32
    %c0_i32_1 = arith.constant 0 : i32
    return %c0_i32, %c0_i32_0 : i32, i32
  }
  func.func @transform_1(%arg0: i32) -> (i32, i32, i32) {
    %c0_i32 = arith.constant 0 : i32
    %c0_i32_0 = arith.constant 0 : i32
    %c0_i32_1 = arith.constant 0 : i32
    return %arg0, %c0_i32, %c0_i32_0 : i32, i32, i32
  }
  func.func @transform_2(%arg0: i32) -> (i32, i32, i32) {
    %c0_i32 = arith.constant 0 : i32
    %c0_i32_0 = arith.constant 0 : i32
    %c0_i32_1 = arith.constant 0 : i32
    return %arg0, %c0_i32, %c0_i32_0 : i32, i32, i32
  }
  func.func @transform_3(%arg0: i32) -> (i32, i32, i32) {
    %c0_i32 = arith.constant 0 : i32
    %c0_i32_0 = arith.constant 0 : i32
    %c0_i32_1 = arith.constant 0 : i32
    return %arg0, %c0_i32, %c0_i32_0 : i32, i32, i32
  }
  func.func @transform_4(%arg0: i32) -> (i32, i32, i32) {
    %c0_i32 = arith.constant 0 : i32
    %c0_i32_0 = arith.constant 0 : i32
    %c0_i32_1 = arith.constant 0 : i32
    return %arg0, %c0_i32, %c0_i32_0 : i32, i32, i32
  }
  func.func @transform_5(%arg0: i32) -> (i32, i32, i32) {
    %c0_i32 = arith.constant 0 : i32
    %c0_i32_0 = arith.constant 0 : i32
    %c0_i32_1 = arith.constant 0 : i32
    return %arg0, %c0_i32, %c0_i32_0 : i32, i32, i32
  }
}

</mosaic_0001>

<bundles_post_ra>
// kernel: tpu_custom_call.1
= control target key start
LH: loop header
LB: loop body
LE: loop exit
PB: predicated region body
PF: predicated region fallthrough
CT: control target
= control target key end

     0   :  { %s1252_s0 = inlined_call_operand.<no memory space> [shape: f32[1,1], index: 0, kind: input, shape index: {}]   ;;  %s1253_s1 = inlined_call_operand.hbm [shape: bf16[2,16,32], index: 1, kind: input, shape index: {}]   ;;  %s1254_s2 = inlined_call_operand.vmem [shape: bf16[2,32,128], index: 2, kind: input, shape index: {}]   ;;  %s1255_s3 = inlined_call_operand.vmem [shape: f32[2,16,1], index: 3, kind: input, shape index: {}]   ;;  %s1256_s4 = inlined_call_operand.vmem [shape: f32[2,1,128], index: 4, kind: input, shape index: {}]   ;;  %s1257_s5 = inlined_call_operand.hbm [shape: f32[2,1,128], index: 5, kind: output, shape index: {}]  }
   0x1   :  { %10 = sst [smem:[#allocation2]] %s1252_s0 }
   0x2   :  { %11 = vsyncpa [#allocation4], 0 }
   0x3   :  { %13 = vsyncpa [#allocation4 + $0x1], 0 }
   0x4   :  { %14 = vsyncpa [#allocation5], 0 }
   0x5   :  { %16 = vsyncpa [#allocation5 + $0x1], 0  ;;  %s1005_s20 = smov 0   ;;  %s1007_s21 = smov 0  }
   0x6   :  { %s1009_s22 = smov 0   ;;  %s1011_s23 = smov 0  }
   0x7 LB: > { %s1026_s0 = sadd.s32 4294967295, %s966_s23   ;;  %s784_s24 = sadd.s32 4294967294, %s966_s23   ;;  %s966_s23 = sphi %s1011_s23, %s1267_s23   ;;  %s962_s22 = sphi %s1009_s22, %s1266_s22   ;;  %s958_s21 = sphi %s1007_s21, %s1265_s21   ;;  %s954_s20 = sphi %s1005_s20, %s1264_s20  }
   0x8   : > { %s1030_s25 = sadd.s32 1, %s966_s23   ;;  %s50_s26 = sadd.s32 1, %s962_s22 }
   0x9   : > { %s47_s27 = ssub.s32 %s966_s23, %s1030_s25  ;;  %p57_p0 = scmp.ne.s32.totalorder %s962_s22, %s958_s21 }
   0xa   : > { %p48_p1 = scmp.eq.s32.totalorder %s47_s27, 0  ;;  %p58_p2 = scmp.eq.s32.totalorder %s966_s23, 0 }
   0xb   : > { %p63_p3 = scmp.ne.s32.totalorder %s958_s21, %s954_s20  ;;  %p64_p4 = scmp.eq.s32.totalorder %s1026_s0, 0 }
   0xc   : > { %s1042_s28 = scalar_select %p48_p1, %s962_s22, %s50_s26  }
   0xd   : > { %p1044_p5 = por %p58_p2, %p57_p0  ;;  %p1048_p6 = por %p64_p4, %p63_p3 }
   0xe   : > { %p165_p7 = scmp.eq.s32.totalorder %s1026_s0, 1  ;;  %p171_p8 = scmp.eq.s32.totalorder %s784_s24, 1 }
   0xf   : > { %p830_p10 = scmp.lt.s32.totalorder %s966_s23, 2  ;;  %s194_s8 = sand.u32 1, %s962_s22  }
  0x10   : > { %p1055_p11 = por %p165_p7, %p57_p0  ;;  %p1059_p12 = por %p171_p8, %p63_p3 }
  0x11   : > { %s812_s9 = sshll.u32 %s966_s23, 3  ;;  %s787_s10 = sshll.u32 %s194_s8, 3 }
  0x12   : > { %s203_s13 = scalar_lea.hbm %s1253_s1, %s812_s9  ;;  %s198_s15 = scalar_lea.vmem [#allocation3], %s787_s10 }
  0x13   : > { %s204_s14 = sshll.u32 %s203_s13, 4  ;;  %s206_s16 = sshll.u32 %s198_s15, 4  ;;  %s205_s14 = int_to_ptr.hbm [resolvable:$true] %s204_s14  ;;  %s207_s16 = int_to_ptr.vmem [resolvable:$true] %s206_s16 }
  0x14   : > { %p1070_p13 = pnand %p830_p10, %p1044_p5  ;;  %p790_p0 = scmp.ge.s32.totalorder %s966_s23, 1 }
  0x15   : > { %p236_p1 = scmp.lt.s32.totalorder %s966_s23, 3  ;;  %s195_s18 = scalar_lea.sflag [#allocation4], %s194_s8 }
  0x16   : > { %s870_s19 = sshra.s32 %s205_s14, 4  ;;  %p874_p3 = pneg %p1070_p13  ;;  %s871_s19 = int_to_ptr.hbm [resolvable:$true] %s870_s19 }
  0x17   : > { %s872_s24 = scalar_lea.hbm %s871_s19, 8  ;;  %s877_s29 = scalar_lea.hbm %s1253_s1, 16 }
  0x18   : > { %p873_p2 = scmp.ne.s32.totalorder %s871_s19, %s872_s24  ;;  %p878_p5 = scmp.lt.s32.totalorder %s871_s19, %s1253_s1 }
  0x19   : > { %p879_p8 = scmp.lt.s32.totalorder %s877_s29, %s872_s24 }
  0x1a   : > { %p875_p4 = pnand %p874_p3, %p873_p2 }
  0x1b   : > { %p880_p10 = por %p879_p8, %p878_p5 }
  0x1c   : > { %p876_p7 = pneg %p875_p4 }
  0x1e   : > { %p881_p9 = pnand %p880_p10, %p876_p7 }
  0x20   : > { %884 = shalt.err (!%p881_p9)
}
  0x21   : > { %s968_s8 = smov 64   ;;  %s969_s11 = smov 4  }
  0x22   : > { %825 = dma.hbm_to_vmem [thread:$0]  (!%p1070_p13), %s205_s14, 128, %s207_s16, %s195_s18, %s968_s8, %s968_s8, %s969_s11  }
  0x23   : > { %p237_p2 = pnand %p790_p0, %p236_p1 }
  0x24   : > { %s1091_s12 = sand.u32 (!%p237_p2), 1, %s958_s21  }
  0x25   : > { %240 = sbr.rel (%p237_p2) target bundleno = 2631 (0xa47), region = 40  ;;  %s791_s13 = sshll.u32 (!%p237_p2), %s1091_s12, 3 }
  0x26   : > { %s243_s15 = scalar_lea.sflag (!%p237_p2), [#allocation4], %s1091_s12  ;;  %s246_s19 = scalar_lea.vmem (!%p237_p2), [#allocation3], %s791_s13 }
  0x2a   : > { %945 = dma.done.wait (%p1048_p6), %s243_s15, 128  }
  0x2b   : > { %947 = vsyncadd (%p1048_p6), %s243_s15, 4294967168  ;;  %p286_p9 = scmp.lt.s32.totalorder %s1026_s0, 1  ;;  %v970_v0 = vmov 0   ;;  %v815_v4 = vld [vmem:[%s246_s19] sm:$0xff]  ;;  %vm326_vm0 = vcmask 261120   ;;  %s306_s8 = sld [smem:[#allocation2]]  ;;  %v348_v6 = vlaneseq }
  0x2c   : > { %868 = vset.pattern.permute.xlu0 %v970_v0  ;;  %vm447_vm14 = vcmask 39936   ;;  %s681_s19 = scalar_lea.hbm %s1257_s5, %s1026_s0  ;;  %s673_s18 = scalar_lea.sflag [#allocation5], %s1091_s12 }
  0x2d   : > { %s1101_s14 = scalar_select %p286_p9, %s1026_s0, 1  ;;  %v1115_v10 = vand.u32 127, %v348_v6 }
  0x2e   : > { %s685_s17 = sshll.u32 %s681_s19, 4  ;;  %s686_s17 = int_to_ptr.hbm [resolvable:$true] %s685_s17 }
  0x2f   : > { %s813_s16 = sshll.u32 %s1101_s14, 4  ;;  %s298_s10 = scalar_lea.vmem %s1256_s4, %s1101_s14  ;;  %v350_v13 = vsub.s32 127, %v1115_v10  ;;  %vm387_vm3 = vcmp.eq.s32.totalorder %v1115_v10, 0  ;;  %vm400_vm4 = vcmp.eq.s32.totalorder %v1115_v10, 1  ;;  %vm413_vm11 = vcmp.eq.s32.totalorder %v1115_v10, 2 }
  0x30   : > { %s290_s24 = scalar_lea.vmem %s1254_s2, %s813_s16  ;;  %s295_s29 = scalar_lea.vmem %s1255_s3, %s813_s16  ;;  %v869_v17 = vld [vmem:[%s298_s10] ss:$0 sm:$0xff]  ;;  %vm426_vm12 = vcmp.eq.s32.totalorder %v1115_v10, 3  ;;  %vm435_vm13 = vcmp.eq.s32.totalorder %v1115_v10, 4 }
  0x31   : > { %v817_v1 = vld [vmem:[%s290_s24 + $0x8] sm:$0xff]  ;;  %v359_v2 = vld [vmem:[%s295_s29] sm:$0xff]  ;;  %s307_s11 = sadd.f32 1.0, %s306_s8  ;;  %s285_s14 = scalar_lea.vmem [#allocation6], %s1091_s12 }
  0x32   : > { %336 = vmatpush.bf16.msra.mxu0 %v817_v1  ;;  %v816_v3 = vld [vmem:[%s290_s24] sm:$0xff]  ;;  %363 = vperm.xlu0 %868, %v359_v2   ;;  %v360_v5 = vld [vmem:[%s295_s29 + $0x8] sm:$0xff]  ;;  %s683_s16 = sshll.u32 %s285_s14, 4  ;;  %s914_s24 = sshra.s32 %s686_s17, 4  ;;  %s684_s16 = int_to_ptr.vmem [resolvable:$true] %s683_s16  ;;  %s915_s24 = int_to_ptr.hbm [resolvable:$true] %s914_s24 }
  0x33   : > { %v308_v7 = vstv %s307_s11  ;;  %s916_s26 = scalar_lea.hbm %s915_s24, 1  ;;  %s920_s29 = scalar_lea.hbm %s1257_s5, 2 }
  0x34   : > { %p917_p6 = scmp.ne.s32.totalorder %s915_s24, %s916_s26  ;;  %p921_p1 = scmp.lt.s32.totalorder %s915_s24, %s1257_s5 }
  0x35   : > { %p922_p3 = scmp.lt.s32.totalorder %s920_s29, %s916_s26 }
  0x36   : > { %337 = vmatpush.bf16.msra.mxu0 %v816_v3  ;;  %v441_v3 = vshrl.u32 %v348_v6, 7  ;;  %p918_p13 = pnand %p917_p6, %p1055_p11 }
  0x37   : > { %p923_p4 = por %p922_p3, %p921_p1 }
  0x38   : > { %p919_p0 = pneg %p918_p13 }
  0x39   : > { %808 = vmatmul.msk.bf16.vlgmr.msra.gmra.mxu0 %vm326_vm0, %v815_v4  ;;  %v442_v4 = vadd.s32 8, %v441_v3 }
  0x3a   : > { %368 = vperm.xlu0 %868, %v360_v5   ;;  %v443_v5 = vmul.u32 5, %v441_v3  ;;  %p924_p7 = pnand %p923_p4, %p919_p0 }
  0xa4   : > { %v364_v15 = vpop.permute.xlu0 %363 }
  0xac   : > { %v369_v26 = vpop.permute.xlu0 %368 }
  0xb6   : > { %v339_v8 = vpop.f32.mrf.mxu0 }
  0xb7   : > { %v340_v9 = vadd.f32 %v339_v8, %v308_v7  ;;  %v1148_v8 = vadd.s32 %v443_v5, %v1115_v10 }
  0xb9   : > { %v344_v11 = vmax.f32 %v340_v9, 1.0 }
  0xbb   : > { %v346_v12 = vmin.f32 %v344_v11, 3e+38 }
  0xbd   : > { %v353_v14 = vand.u32 4294967168, %v346_v12 }
  0xbe   : > { %v341_v16 = vpop.f32.mrf.mxu0 }
  0xbf   : > { %v355_v18 = vor.u32 %v353_v14, %v350_v13  ;;  %v342_v19 = vadd.f32 %v341_v16, %v308_v7  ;;  %v444_v7 = vmul.u32 5, %v442_v4 }
  0xc1   : > { %v371_v20 = vadd.f32 %v364_v15, %v355_v18  ;;  %v345_v21 = vmax.f32 %v342_v19, 1.0  ;;  %v1151_v9 = vadd.s32 %v444_v7, %v1115_v10 }
  0xc3   : > { %v377_v22 = vadd.f32 %v869_v17, %v371_v20  ;;  %v347_v23 = vmin.f32 %v345_v21, 3e+38 }
  0xc5   : > { %v354_v24 = vand.u32 4294967168, %v347_v23  ;;  %379 = vmax.xlane.f32.xlu1 %v377_v22 }
  0xc7   : > { %v356_v25 = vor.u32 %v354_v24, %v350_v13 }
  0xc9   : > { %v372_v27 = vadd.f32 %v369_v26, %v356_v25 }
  0xcb   : > { %v378_v28 = vadd.f32 %v869_v17, %v372_v27 }
  0xcd   : > { %381 = vmax.xlane.f32.xlu1 %v378_v28 }
 0x138   : > { %v380_v29 = vpop.xlane.xlu1 %379 }
 0x139   : > { %vm383_vm1 = vcmp.eq.f32.partialorder %v377_v22, %v380_v29  ;;  %v390_v33 = vsel %vm387_vm3, %v380_v29, -inf }
 0x13a   : > { %v385_v30 = vsel %vm383_vm1, -inf, %v377_v22 }
 0x13b   : > { %392 = vmax.xlane.f32.xlu2 %v385_v30 }
 0x140   : > { %v382_v31 = vpop.xlane.xlu1 %381 }
 0x141   : > { %vm384_vm2 = vcmp.eq.f32.partialorder %v378_v28, %v382_v31  ;;  %v391_v48 = vsel %vm387_vm3, %v382_v31, -inf }
 0x142   : > { %v386_v32 = vsel %vm384_vm2, -inf, %v378_v28 }
 0x143   : > { %394 = vmax.xlane.f32.xlu2 %v386_v32 }
 0x1ae   : > { %v393_v34 = vpop.xlane.xlu2 %392 }
 0x1af   : > { %vm396_vm5 = vcmp.eq.f32.partialorder %v385_v30, %v393_v34  ;;  %v403_v35 = vsel %vm400_vm4, %v393_v34, %v390_v33 }
 0x1b0   : > { %v398_v36 = vsel %vm396_vm5, -inf, %v385_v30 }
 0x1b1   : > { %405 = vmax.xlane.f32.xlu0 %v398_v36 }
 0x1b6   : > { %v395_v37 = vpop.xlane.xlu2 %394 }
 0x1b7   : > { %vm397_vm6 = vcmp.eq.f32.partialorder %v386_v32, %v395_v37  ;;  %v404_v50 = vsel %vm400_vm4, %v395_v37, %v391_v48 }
 0x1b8   : > { %v399_v38 = vsel %vm397_vm6, -inf, %v386_v32 }
 0x1b9   : > { %407 = vmax.xlane.f32.xlu1 %v399_v38 }
 0x224   : > { %v406_v39 = vpop.xlane.xlu0 %405 }
 0x225   : > { %vm409_vm7 = vcmp.eq.f32.partialorder %v398_v36, %v406_v39  ;;  %v416_v49 = vsel %vm413_vm11, %v406_v39, %v403_v35 }
 0x226   : > { %v411_v40 = vsel %vm409_vm7, -inf, %v398_v36 }
 0x227   : > { %418 = vmax.xlane.f32.xlu2 %v411_v40 }
 0x22c   : > { %v408_v41 = vpop.xlane.xlu1 %407 }
 0x22d   : > { %vm410_vm8 = vcmp.eq.f32.partialorder %v399_v38, %v408_v41  ;;  %v417_v52 = vsel %vm413_vm11, %v408_v41, %v404_v50 }
 0x22e   : > { %v412_v42 = vsel %vm410_vm8, -inf, %v399_v38 }
 0x22f   : > { %420 = vmax.xlane.f32.xlu1 %v412_v42 }
 0x29a   : > { %v419_v43 = vpop.xlane.xlu2 %418 }
 0x29b   : > { %vm422_vm9 = vcmp.eq.f32.partialorder %v411_v40, %v419_v43  ;;  %v429_v51 = vsel %vm426_vm12, %v419_v43, %v416_v49 }
 0x29c   : > { %v424_v44 = vsel %vm422_vm9, -inf, %v411_v40 }
 0x29d   : > { %431 = vmax.xlane.f32.xlu2 %v424_v44 }
 0x2a2   : > { %v421_v45 = vpop.xlane.xlu1 %420 }
 0x2a3   : > { %vm423_vm10 = vcmp.eq.f32.partialorder %v412_v42, %v421_v45  ;;  %v430_v54 = vsel %vm426_vm12, %v421_v45, %v417_v52 }
 0x2a4   : > { %v425_v46 = vsel %vm423_vm10, -inf, %v412_v42 }
 0x2a5   : > { %433 = vmax.xlane.f32.xlu1 %v425_v46 }
 0x310   : > { %v432_v47 = vpop.xlane.xlu2 %431 }
 0x311   : > { %v438_v53 = vsel %vm435_vm13, %v432_v47, %v429_v51 }
 0x312   : > { %v448_v57 = vsel %vm447_vm14, %v438_v53, -inf }
 0x318   : > { %v434_v55 = vpop.xlane.xlu1 %433 }
 0x319   : > { %v439_v56 = vsel %vm435_vm13, %v434_v55, %v430_v54 }
 0x31a   : > { %v449_v58 = vsel %vm447_vm14, %v439_v56, -inf }
 0x31b   : > { %v450_v59 = vmax.f32 %v448_v57, %v449_v58 }
 0x31d   : > { %v451_v60 = vrot.slane %v450_v59, 4 }
 0x31f   : > { %v452_v61 = vmax.f32 %v450_v59, %v451_v60 }
 0x321   : > { %v453_v62 = vrot.slane %v452_v61, 2 }
 0x323   : > { %v454_v63 = vmax.f32 %v452_v61, %v453_v62 }
 0x325   : > { %v455_v0 = vrot.slane %v454_v63, 1 }
 0x327   : > { %v456_v1 = vmax.f32 %v454_v63, %v455_v0 }
 0x329   : > { %v457_v2 = vsel %vm447_vm14, %v456_v1, -inf }
 0x32a   : > { %458 = vmax.xlane.f32.xlu2 %v457_v2 }
 0x39d   : > { %v1153_v11 = vpop.xlane.xlu2 %458 }
 0x39e   : > { %vm460_vm15 = vcmp.eq.f32.partialorder %v438_v53, %v1153_v11  ;;  %vm461_vm0 = vcmp.eq.f32.partialorder %v439_v56, %v1153_v11 }
 0x39f   : > { %v462_v12 = vsel %vm460_vm15, %v1148_v8, 80  ;;  %v463_v13 = vsel %vm461_vm0, %v1151_v9, 80 }
 0x3a0   : > { %v464_v6 = vsel %vm447_vm14, %v462_v12, 2147483647  ;;  %v465_v14 = vsel %vm447_vm14, %v463_v13, 2147483647 }
 0x3a1   : > { %vm466_vm1 = vcmp.lt.s32.totalorder %v464_v6, %v465_v14 }
 0x3a2   : > { %v467_v15 = vsel %vm466_vm1, %v464_v6, %v465_v14 }
 0x3a3   : > { %v468_v16 = vrot.slane %v467_v15, 4 }
 0x3a5   : > { %vm469_vm2 = vcmp.lt.s32.totalorder %v467_v15, %v468_v16 }
 0x3a6   : > { %v470_v17 = vsel %vm469_vm2, %v467_v15, %v468_v16 }
 0x3a7   : > { %v471_v18 = vrot.slane %v470_v17, 2 }
 0x3a9   : > { %vm472_vm5 = vcmp.lt.s32.totalorder %v470_v17, %v471_v18 }
 0x3aa   : > { %v473_v19 = vsel %vm472_vm5, %v470_v17, %v471_v18 }
 0x3ab   : > { %v474_v20 = vrot.slane %v473_v19, 1 }
 0x3ad   : > { %vm475_vm6 = vcmp.lt.s32.totalorder %v473_v19, %v474_v20 }
 0x3ae   : > { %v476_v21 = vsel %vm475_vm6, %v473_v19, %v474_v20 }
 0x3af   : > { %v477_v22 = vsel %vm447_vm14, %v476_v21, 2147483647 }
 0x3b0   : > { %v479_v23 = vshra.s32 %v477_v22, 16  ;;  %v478_v25 = vand.u32 65535, %v477_v22 }
 0x3b2   : > { %v481_v24 = vcvt.s32.f32 %v479_v23  ;;  %v480_v27 = vcvt.s32.f32 %v478_v25 }
 0x3b4   : > { %482 = vmin.xlane.f32.xlu1 %v481_v24 }
 0x427   : > { %v483_v26 = vpop.xlane.xlu1 %482 }
 0x428   : > { %vm484_vm7 = vcmp.eq.f32.partialorder %v481_v24, %v483_v26  ;;  %v489_v29 = vcvt.f32.s32 %v483_v26 }
 0x429   : > { %v485_v28 = vsel %vm484_vm7, %v480_v27, inf }
 0x42a   : > { %486 = vmin.xlane.f32.xlu2 %v485_v28  ;;  %v490_v31 = vshll.u32 %v489_v29, 16 }
 0x49d   : > { %v487_v30 = vpop.xlane.xlu2 %486 }
 0x49e   : > { %v488_v32 = vcvt.f32.s32 %v487_v30 }
 0x4a0   : > { %v491_v33 = vadd.s32 %v490_v31, %v488_v32 }
 0x4a2   : > { %vm492_vm8 = vcmp.eq.s32.totalorder %v1148_v8, %v491_v33  ;;  %vm493_vm9 = vcmp.eq.s32.totalorder %v1151_v9, %v491_v33 }
 0x4a3   : > { %v494_v34 = vsel %vm492_vm8, -inf, %v438_v53  ;;  %v495_v35 = vsel %vm493_vm9, -inf, %v439_v56 }
 0x4a4   : > { %v497_v36 = vsel %vm447_vm14, %v494_v34, -inf  ;;  %v498_v37 = vsel %vm447_vm14, %v495_v35, -inf }
 0x4a5   : > { %v499_v38 = vmax.f32 %v497_v36, %v498_v37 }
 0x4a7   : > { %v500_v39 = vrot.slane %v499_v38, 4 }
 0x4a9   : > { %v501_v40 = vmax.f32 %v499_v38, %v500_v39 }
 0x4ab   : > { %v502_v41 = vrot.slane %v501_v40, 2 }
 0x4ad   : > { %v503_v42 = vmax.f32 %v501_v40, %v502_v41 }
 0x4af   : > { %v504_v43 = vrot.slane %v503_v42, 1 }
 0x4b1   : > { %v505_v44 = vmax.f32 %v503_v42, %v504_v43 }
 0x4b3   : > { %v506_v45 = vsel %vm447_vm14, %v505_v44, -inf }
 0x4b4   : > { %507 = vmax.xlane.f32.xlu1 %v506_v45 }
 0x527   : > { %v1167_v46 = vpop.xlane.xlu1 %507 }
 0x528   : > { %vm509_vm10 = vcmp.eq.f32.partialorder %v494_v34, %v1167_v46  ;;  %vm510_vm15 = vcmp.eq.f32.partialorder %v495_v35, %v1167_v46 }
 0x529   : > { %v511_v47 = vsel %vm509_vm10, %v1148_v8, 80  ;;  %v512_v48 = vsel %vm510_vm15, %v1151_v9, 80 }
 0x52a   : > { %v513_v49 = vsel %vm447_vm14, %v511_v47, 2147483647  ;;  %v514_v50 = vsel %vm447_vm14, %v512_v48, 2147483647 }
 0x52b   : > { %vm515_vm0 = vcmp.lt.s32.totalorder %v513_v49, %v514_v50 }
 0x52c   : > { %v516_v51 = vsel %vm515_vm0, %v513_v49, %v514_v50 }
 0x52d   : > { %v517_v52 = vrot.slane %v516_v51, 4 }
 0x52f   : > { %vm518_vm1 = vcmp.lt.s32.totalorder %v516_v51, %v517_v52 }
 0x530   : > { %v519_v53 = vsel %vm518_vm1, %v516_v51, %v517_v52 }
 0x531   : > { %v520_v54 = vrot.slane %v519_v53, 2 }
 0x533   : > { %vm521_vm2 = vcmp.lt.s32.totalorder %v519_v53, %v520_v54 }
 0x534   : > { %v522_v55 = vsel %vm521_vm2, %v519_v53, %v520_v54 }
 0x535   : > { %v523_v56 = vrot.slane %v522_v55, 1 }
 0x537   : > { %vm524_vm5 = vcmp.lt.s32.totalorder %v522_v55, %v523_v56 }
 0x538   : > { %v525_v57 = vsel %vm524_vm5, %v522_v55, %v523_v56 }
 0x539   : > { %v526_v58 = vsel %vm447_vm14, %v525_v57, 2147483647 }
 0x53a   : > { %v528_v59 = vshra.s32 %v526_v58, 16  ;;  %v527_v61 = vand.u32 65535, %v526_v58 }
 0x53c   : > { %v530_v60 = vcvt.s32.f32 %v528_v59  ;;  %v529_v63 = vcvt.s32.f32 %v527_v61 }
 0x53e   : > { %531 = vmin.xlane.f32.xlu2 %v530_v60 }
 0x5b1   : > { %v532_v62 = vpop.xlane.xlu2 %531 }
 0x5b2   : > { %vm533_vm6 = vcmp.eq.f32.partialorder %v530_v60, %v532_v62  ;;  %v538_v1 = vcvt.f32.s32 %v532_v62 }
 0x5b3   : > { %v534_v0 = vsel %vm533_vm6, %v529_v63, inf }
 0x5b4   : > { %535 = vmin.xlane.f32.xlu1 %v534_v0  ;;  %v539_v3 = vshll.u32 %v538_v1, 16 }
 0x627   : > { %v536_v2 = vpop.xlane.xlu1 %535 }
 0x628   : > { %v537_v4 = vcvt.f32.s32 %v536_v2 }
 0x62a   : > { %v540_v5 = vadd.s32 %v539_v3, %v537_v4 }
 0x62c   : > { %vm541_vm7 = vcmp.eq.s32.totalorder %v1148_v8, %v540_v5  ;;  %vm542_vm8 = vcmp.eq.s32.totalorder %v1151_v9, %v540_v5 }
 0x62d   : > { %v543_v7 = vsel %vm541_vm7, -inf, %v494_v34  ;;  %v544_v12 = vsel %vm542_vm8, -inf, %v495_v35 }
 0x62e   : > { %v546_v13 = vsel %vm447_vm14, %v543_v7, -inf  ;;  %v547_v6 = vsel %vm447_vm14, %v544_v12, -inf }
 0x62f   : > { %v548_v14 = vmax.f32 %v546_v13, %v547_v6 }
 0x631   : > { %v549_v15 = vrot.slane %v548_v14, 4 }
 0x633   : > { %v550_v16 = vmax.f32 %v548_v14, %v549_v15 }
 0x635   : > { %v551_v17 = vrot.slane %v550_v16, 2 }
 0x637   : > { %v552_v18 = vmax.f32 %v550_v16, %v551_v17 }
 0x639   : > { %v553_v19 = vrot.slane %v552_v18, 1 }
 0x63b   : > { %v554_v20 = vmax.f32 %v552_v18, %v553_v19 }
 0x63d   : > { %v555_v21 = vsel %vm447_vm14, %v554_v20, -inf }
 0x63e   : > { %556 = vmax.xlane.f32.xlu2 %v555_v21 }
 0x6b1   : > { %v1181_v22 = vpop.xlane.xlu2 %556 }
 0x6b2   : > { %vm558_vm9 = vcmp.eq.f32.partialorder %v543_v7, %v1181_v22  ;;  %vm559_vm10 = vcmp.eq.f32.partialorder %v544_v12, %v1181_v22 }
 0x6b3   : > { %v560_v23 = vsel %vm558_vm9, %v1148_v8, 80  ;;  %v561_v24 = vsel %vm559_vm10, %v1151_v9, 80 }
 0x6b4   : > { %v562_v25 = vsel %vm447_vm14, %v560_v23, 2147483647  ;;  %v563_v26 = vsel %vm447_vm14, %v561_v24, 2147483647 }
 0x6b5   : > { %vm564_vm15 = vcmp.lt.s32.totalorder %v562_v25, %v563_v26 }
 0x6b6   : > { %v565_v27 = vsel %vm564_vm15, %v562_v25, %v563_v26 }
 0x6b7   : > { %v566_v28 = vrot.slane %v565_v27, 4 }
 0x6b9   : > { %vm567_vm0 = vcmp.lt.s32.totalorder %v565_v27, %v566_v28 }
 0x6ba   : > { %v568_v29 = vsel %vm567_vm0, %v565_v27, %v566_v28 }
 0x6bb   : > { %v569_v30 = vrot.slane %v568_v29, 2 }
 0x6bd   : > { %vm570_vm1 = vcmp.lt.s32.totalorder %v568_v29, %v569_v30 }
 0x6be   : > { %v571_v31 = vsel %vm570_vm1, %v568_v29, %v569_v30 }
 0x6bf   : > { %v572_v32 = vrot.slane %v571_v31, 1 }
 0x6c1   : > { %vm573_vm2 = vcmp.lt.s32.totalorder %v571_v31, %v572_v32 }
 0x6c2   : > { %v574_v33 = vsel %vm573_vm2, %v571_v31, %v572_v32 }
 0x6c3   : > { %v575_v34 = vsel %vm447_vm14, %v574_v33, 2147483647 }
 0x6c4   : > { %v577_v35 = vshra.s32 %v575_v34, 16  ;;  %v576_v37 = vand.u32 65535, %v575_v34 }
 0x6c6   : > { %v579_v36 = vcvt.s32.f32 %v577_v35  ;;  %v578_v39 = vcvt.s32.f32 %v576_v37 }
 0x6c8   : > { %580 = vmin.xlane.f32.xlu0 %v579_v36 }
 0x73b   : > { %v581_v38 = vpop.xlane.xlu0 %580 }
 0x73c   : > { %vm582_vm5 = vcmp.eq.f32.partialorder %v579_v36, %v581_v38  ;;  %v587_v41 = vcvt.f32.s32 %v581_v38 }
 0x73d   : > { %v583_v40 = vsel %vm582_vm5, %v578_v39, inf }
 0x73e   : > { %584 = vmin.xlane.f32.xlu1 %v583_v40  ;;  %v588_v43 = vshll.u32 %v587_v41, 16  ;;  %v971_v41 = vmov 0.0  }
 0x7b1   : > { %v585_v42 = vpop.xlane.xlu1 %584 }
 0x7b2   : > { %v586_v44 = vcvt.f32.s32 %v585_v42 }
 0x7b4   : > { %v589_v45 = vadd.s32 %v588_v43, %v586_v44 }
 0x7b6   : > { %vm590_vm6 = vcmp.eq.s32.totalorder %v1148_v8, %v589_v45  ;;  %vm591_vm7 = vcmp.eq.s32.totalorder %v1151_v9, %v589_v45 }
 0x7b7   : > { %v592_v47 = vsel %vm590_vm6, -inf, %v543_v7  ;;  %v593_v48 = vsel %vm591_vm7, -inf, %v544_v12 }
 0x7b8   : > { %v595_v49 = vsel %vm447_vm14, %v592_v47, -inf  ;;  %v596_v50 = vsel %vm447_vm14, %v593_v48, -inf }
 0x7b9   : > { %v597_v51 = vmax.f32 %v595_v49, %v596_v50 }
 0x7bb   : > { %v598_v52 = vrot.slane %v597_v51, 4 }
 0x7bd   : > { %v599_v53 = vmax.f32 %v597_v51, %v598_v52 }
 0x7bf   : > { %v600_v54 = vrot.slane %v599_v53, 2 }
 0x7c1   : > { %v601_v55 = vmax.f32 %v599_v53, %v600_v54 }
 0x7c3   : > { %v602_v56 = vrot.slane %v601_v55, 1 }
 0x7c5   : > { %v603_v57 = vmax.f32 %v601_v55, %v602_v56 }
 0x7c7   : > { %v604_v58 = vsel %vm447_vm14, %v603_v57, -inf }
 0x7c8   : > { %605 = vmax.xlane.f32.xlu2 %v604_v58 }
 0x83b   : > { %v606_v59 = vpop.xlane.xlu2 %605 }
 0x83c   : > { %vm607_vm8 = vcmp.eq.f32.partialorder %v592_v47, %v606_v59  ;;  %vm608_vm9 = vcmp.eq.f32.partialorder %v593_v48, %v606_v59 }
 0x83d   : > { %v609_v60 = vsel %vm607_vm8, %v1148_v8, 80  ;;  %v610_v61 = vsel %vm608_vm9, %v1151_v9, 80 }
 0x83e   : > { %v611_v62 = vsel %vm447_vm14, %v609_v60, 2147483647  ;;  %v612_v63 = vsel %vm447_vm14, %v610_v61, 2147483647 }
 0x83f   : > { %vm613_vm10 = vcmp.lt.s32.totalorder %v611_v62, %v612_v63 }
 0x840   : > { %v614_v0 = vsel %vm613_vm10, %v611_v62, %v612_v63 }
 0x841   : > { %v615_v1 = vrot.slane %v614_v0, 4 }
 0x843   : > { %vm616_vm15 = vcmp.lt.s32.totalorder %v614_v0, %v615_v1 }
 0x844   : > { %v617_v2 = vsel %vm616_vm15, %v614_v0, %v615_v1 }
 0x845   : > { %v618_v3 = vrot.slane %v617_v2, 2 }
 0x847   : > { %vm619_vm0 = vcmp.lt.s32.totalorder %v617_v2, %v618_v3 }
 0x848   : > { %v620_v4 = vsel %vm619_vm0, %v617_v2, %v618_v3 }
 0x849   : > { %v621_v5 = vrot.slane %v620_v4, 1 }
 0x84b   : > { %vm622_vm1 = vcmp.lt.s32.totalorder %v620_v4, %v621_v5 }
 0x84c   : > { %v623_v7 = vsel %vm622_vm1, %v620_v4, %v621_v5 }
 0x84d   : > { %v624_v12 = vsel %vm447_vm14, %v623_v7, 2147483647 }
 0x84e   : > { %v626_v13 = vshra.s32 %v624_v12, 16  ;;  %v625_v14 = vand.u32 65535, %v624_v12 }
 0x850   : > { %v628_v6 = vcvt.s32.f32 %v626_v13  ;;  %v627_v16 = vcvt.s32.f32 %v625_v14 }
 0x852   : > { %629 = vmin.xlane.f32.xlu0 %v628_v6 }
 0x8c5   : > { %v630_v15 = vpop.xlane.xlu0 %629 }
 0x8c6   : > { %vm631_vm2 = vcmp.eq.f32.partialorder %v628_v6, %v630_v15  ;;  %v636_v18 = vcvt.f32.s32 %v630_v15 }
 0x8c7   : > { %v632_v17 = vsel %vm631_vm2, %v627_v16, inf }
 0x8c8   : > { %633 = vmin.xlane.f32.xlu1 %v632_v17  ;;  %v637_v20 = vshll.u32 %v636_v18, 16 }
 0x93b   : > { %v634_v19 = vpop.xlane.xlu1 %633 }
 0x93c   : > { %v635_v21 = vcvt.f32.s32 %v634_v19 }
 0x93e   : > { %v638_v23 = vadd.s32 %v637_v20, %v635_v21 }
 0x940   : > { %vm639_vm5 = vcmp.eq.s32.totalorder %v1148_v8, %v638_v23  ;;  %vm640_vm6 = vcmp.eq.s32.totalorder %v1151_v9, %v638_v23  ;;  %v496_v8 = vsel %vm387_vm3, %v1153_v11, -inf }
 0x941   : > { %v641_v24 = vsel %vm639_vm5, -inf, %v592_v47  ;;  %v642_v25 = vsel %vm640_vm6, -inf, %v593_v48  ;;  %v545_v9 = vsel %vm400_vm4, %v1167_v46, %v496_v8 }
 0x942   : > { %v644_v26 = vsel %vm447_vm14, %v641_v24, -inf  ;;  %v645_v27 = vsel %vm447_vm14, %v642_v25, -inf  ;;  %v594_v36 = vsel %vm413_vm11, %v1181_v22, %v545_v9 }
 0x943   : > { %v646_v28 = vmax.f32 %v644_v26, %v645_v27  ;;  %v643_v37 = vsel %vm426_vm12, %v606_v59, %v594_v36 }
 0x945   : > { %v647_v29 = vrot.slane %v646_v28, 4 }
 0x947   : > { %v648_v30 = vmax.f32 %v646_v28, %v647_v29 }
 0x949   : > { %v649_v31 = vrot.slane %v648_v30, 2 }
 0x94b   : > { %v650_v32 = vmax.f32 %v648_v30, %v649_v31 }
 0x94d   : > { %v651_v33 = vrot.slane %v650_v32, 1 }
 0x94f   : > { %v652_v34 = vmax.f32 %v650_v32, %v651_v33 }
 0x951   : > { %v653_v35 = vsel %vm447_vm14, %v652_v34, -inf }
 0x952   : > { %654 = vmax.xlane.f32.xlu2 %v653_v35 }
 0x9c5   : > { %v655_v38 = vpop.xlane.xlu2 %654 }
 0x9c6   : > { %v656_v39 = vsel %vm435_vm13, %v655_v38, %v643_v37 }
 0x9c7   : > { %vm657_vm14 = vcmp.ne.f32.partialorder %v656_v39, -inf }
 0x9c8   : > { %v662_v40 = vsel %vm657_vm14, %v656_v39, inf  ;;  %v658_v11 = vsel %vm657_vm14, 1.0, %v971_v41 }
 0x9c9   : > { %663 = vmin.xlane.f32.xlu1 %v662_v40  ;;  %659 = vmax.xlane.f32.xlu0 %v658_v11 }
 0xa3c   : > { %v664_v46 = vpop.xlane.xlu1 %663  ;;  %v660_v42 = vpop.xlane.xlu0 %659 }
 0xa3d   : > { %vm661_vm3 = vcmp.gt.f32.partialorder %v660_v42, 0.0 }
 0xa3e   : > { %v665_v22 = vsel %vm661_vm3, %v664_v46, -inf }
 0xa3f   : > { %v666_v43 = vsel %vm657_vm14, %v656_v39, %v665_v22 }
 0xa40   : > { %v668_v10 = vand.u32 4294967168, %v666_v43 }
 0xa42   : > { %v809_v44 = vadd.f32 -1.0, %v668_v10 }
 0xa44   : > { %671 = vst [vmem:[%s285_s14] sm:$0x1] %v809_v44 }
 0xa45   : > { %927 = shalt.err (!%p924_p7)
}
 0xa46   : > { %820 = dma.vmem_to_hbm [thread:$0]  (%p1055_p11), %s684_s16, 16, %s686_s17, %s673_s18  }
 0xa47 PF: > { %s697_s12 = sand.u32 1, %s954_s20   ;;  %p1263_p5 = scmp.ge.s32.totalorder %s966_s23, 2 }
 0xa48   : > { %s698_s10 = scalar_lea.sflag [#allocation5], %s697_s12 }
 0xa49   : > { %p827_p8 = pnand %p1263_p5, %p1059_p12 }
 0xa4b   : > { %p828_p10 = pneg %p827_p8 }
 0xa4d   : > { %949 = dma.done.wait (%p828_p10), %s698_s10, 16  }
 0xa4e   : > { %951 = vsyncadd (%p828_p10), %s698_s10, 4294967280  ;;  %p19_p2 = scmp.ge.s32.totalorder %s1030_s25, 4   ;;  %s1264_s20 = smov %s958_s21 }
 0xa4f   : > { %s1265_s21 = smov %s962_s22  ;;  %s1266_s22 = smov %s1042_s28 }
 0xa50   : > { %s1267_s23 = smov %s1030_s25  ;;  %21 = sbr.rel (!%p19_p2) target bundleno = 7 (0x7), region = 94 }
 0xa55   :  { %703 = vsyncpa [#allocation4], 1 }
 0xa56   :  { %705 = vsyncpa [#allocation4 + $0x1], 1 }
 0xa57   :  { %706 = vsyncpa [#allocation5], 1 }
 0xa58   :  { %708 = vsyncpa [#allocation5 + $0x1], 1 }

</bundles_post_ra>
